<compile_context>
chip_gen: v7x
topology: tpu7x:2x2x1
jax: 0.10.0
libtpu: 0.0.40
codegen_flags: <defaults>
</compile_context>

<pallas_src>
import functools

import jax
import jax.numpy as jnp
from jax import lax
from jax.experimental import pallas as pl
from jax.experimental.pallas import tpu as pltpu


# --------------------------------------------------------------------------- #
# Kernels
# --------------------------------------------------------------------------- #
def conv_stats_kernel(w_ref, p_ref, conv_ref, sum_ref, ssq_ref):
    """One (image, spatial-tile) step: conv tile + per-tile BN partial stats.

    w_ref:    (Cout, Kp)       folded conv weights (resident across the grid)
    p_ref:    (1, Kp, TM)      im2col patch columns (spatial on lanes)
    conv_ref: (1, Cout, TM)    conv output tile (lane-dense, bf16 or f32)
    sum_ref:  (1, 1, Cout, 1)  per-tile per-channel sum            (f32)
    ssq_ref:  (1, 1, Cout, 1)  per-tile per-channel sum-of-squares (f32)
    """
    acc = jnp.dot(w_ref[...], p_ref[0], preferred_element_type=jnp.float32)
    conv_ref[...] = acc.astype(conv_ref.dtype).reshape(conv_ref.shape)
    cout = acc.shape[0]
    sum_ref[...] = jnp.sum(acc, axis=1, keepdims=True).reshape(1, 1, cout, 1)
    ssq_ref[...] = jnp.sum(acc * acc, axis=1, keepdims=True).reshape(1, 1, cout, 1)


def bn_relu_kernel(scale_ref, shift_ref, conv_ref, o_ref):
    """Folded BatchNorm (per-channel scale/shift) + ReLU: one FMA + max."""
    x = conv_ref[...].astype(jnp.float32)
    o_ref[...] = jnp.maximum(x * scale_ref[...] + shift_ref[...], 0.0)


# --------------------------------------------------------------------------- #
# Tiling helpers
# --------------------------------------------------------------------------- #
def _round_up(x, m):
    return (x + m - 1) // m * m


def _vmem_budget():
    """(double-buffered data budget, explicit scoped-VMEM limit) in bytes.

    v5e/v6e have 128 MiB VMEM (scoped defaults 16/32 MiB); v7x has 64 MiB per
    TensorCore.  Capacity query is best-effort with a conservative fallback.
    """
    try:
        cap = int(pltpu.get_tpu_info().vmem_capacity_bytes)
    except Exception:
        cap = 64 * 1024 * 1024
    limit = min(cap // 2, 48 * 1024 * 1024)
    budget = min(cap // 4, 24 * 1024 * 1024)
    return budget, limit


def _pick_tile(hw, n_images, bytes_per_col, budget):
    """Largest lane tile TM (multiple of 128) such that
      * the double-buffered per-step working set fits `budget`,
      * zero-padding waste of the per-image spatial dim stays under ~25%,
      * the total grid has >= 4 steps when possible (pipeline overlap on both
        TensorCores of a v7x megacore).
    Always returns a legal choice: 128 with HW padded up to a multiple of 128.
    """
    for t in (4096, 2048, 1024, 512, 256, 128):
        hwp = _round_up(hw, t)
        if 2 * t * bytes_per_col > budget:
            continue
        if (hwp - hw) * 4 > hw:
            continue
        if n_images * (hwp // t) < 4 and t > 128:
            continue
        return t, hwp
    return 128, _round_up(hw, 128)


# --------------------------------------------------------------------------- #
# Wrapper
# --------------------------------------------------------------------------- #
def cbr2d_forward(x_nchw, w_oihw, b, gamma, beta, eps=1e-5, use_bf16=True):
    """Conv2d(k=3,s=1,p=1,bias) + BatchNorm2d (training batch stats) + ReLU.

    x_nchw: (N, Cin, H, W) f32 -> (N, Cout, H, W) f32.
    `b` is accepted for API parity but unused: training-mode BN's mean
    subtraction cancels the conv bias exactly (NOT valid for eval mode).
    """
    del b
    N, Cin, H, W = x_nchw.shape
    Cout, _, KH, KW = w_oihw.shape
    HW = H * W
    K = KH * KW * Cin
    cdt = jnp.bfloat16 if use_bf16 else jnp.float32
    Kp = _round_up(K, 16 if use_bf16 else 8)

    budget, vmem_limit = _vmem_budget()
    bytes_per_col = (Kp + 2 * Cout) * jnp.dtype(cdt).itemsize
    TM, HWp = _pick_tile(HW, N, bytes_per_col, budget)
    tiles = HWp // TM
    grid = (N, tiles)

    # ---- layout plumbing (wrapper): im2col patch matrix, spatial on lanes ----
    # TODO(synk): for realistic Cin, build patches in-kernel from a halo-band
    #             DMA to avoid the 9x materialization below.
    xp = jnp.pad(x_nchw, ((0, 0), (0, 0), (1, 1), (1, 1)))
    taps = [xp[:, :, kh:kh + H, kw:kw + W] for kh in range(KH) for kw in range(KW)]
    patches = jnp.stack(taps, axis=1).reshape(N, K, HW)        # k order (kh,kw,ci)
    patches = jnp.pad(patches, ((0, 0), (0, Kp - K), (0, HWp - HW)))
    patches = patches.astype(cdt)
    w2 = w_oihw.transpose(0, 2, 3, 1).reshape(Cout, K)         # same k order
    w2 = jnp.pad(w2, ((0, 0), (0, Kp - K))).astype(cdt)

    # ---- pass 1: conv + per-tile BN partial stats, single fused pass ----
    conv, psum, pssq = pl.pallas_call(
        conv_stats_kernel,
        out_shape=(jax.ShapeDtypeStruct((N, Cout, HWp), cdt),
                   jax.ShapeDtypeStruct((N, tiles, Cout, 1), jnp.float32),
                   jax.ShapeDtypeStruct((N, tiles, Cout, 1), jnp.float32)),
        grid=grid,
        in_specs=[pl.BlockSpec((Cout, Kp), lambda n, t: (0, 0)),       # weights resident
                  pl.BlockSpec((1, Kp, TM), lambda n, t: (n, 0, t))],  # patch tile
        out_specs=(pl.BlockSpec((1, Cout, TM), lambda n, t: (n, 0, t)),
                   pl.BlockSpec((1, 1, Cout, 1), lambda n, t: (n, t, 0, 0)),
                   pl.BlockSpec((1, 1, Cout, 1), lambda n, t: (n, t, 0, 0))),
        compiler_params=pltpu.CompilerParams(
            dimension_semantics=("parallel", "parallel"),
            vmem_limit_bytes=vmem_limit),
    )(w2, patches)

    # ---- finalize BN stats (O(Cout) scalars) and fold into scale/shift ----
    # Padded spatial columns are all-zero patches -> conv==0 -> contribute 0 to
    # the sums; dividing by the true M keeps the statistics exact.
    M = N * HW
    sums = jnp.sum(psum, axis=(0, 1))[:, 0]
    sumsq = jnp.sum(pssq, axis=(0, 1))[:, 0]
    mean = sums / M
    var = jnp.maximum(sumsq / M - mean * mean, 0.0)   # biased var (BN training)
    inv_std = lax.rsqrt(var + eps)
    scale = (gamma * inv_std).astype(jnp.float32).reshape(1, Cout, 1)
    shift = (beta - mean * gamma * inv_std).astype(jnp.float32).reshape(1, Cout, 1)

    # ---- pass 2: normalize (1 FMA/elem) + ReLU, writes NCHW-flat directly ----
    out = pl.pallas_call(
        bn_relu_kernel,
        out_shape=jax.ShapeDtypeStruct((N, Cout, HWp), jnp.float32),
        grid=grid,
        in_specs=[pl.BlockSpec((1, Cout, 1), lambda n, t: (0, 0, 0)),
                  pl.BlockSpec((1, Cout, 1), lambda n, t: (0, 0, 0)),
                  pl.BlockSpec((1, Cout, TM), lambda n, t: (n, 0, t))],
        out_specs=pl.BlockSpec((1, Cout, TM), lambda n, t: (n, 0, t)),
        compiler_params=pltpu.CompilerParams(
            dimension_semantics=("parallel", "parallel"),
            vmem_limit_bytes=vmem_limit),
    )(scale, shift, conv)

    if HWp != HW:
        out = out[:, :, :HW]
    return out.reshape(N, Cout, H, W)   # free reshape — no transpose


# --------------------------------------------------------------------------- #
# Pure-JAX reference (matches the PyTorch module's training-mode forward)
# --------------------------------------------------------------------------- #
def _reference(x_nchw, w_oihw, b, gamma, beta, eps=1e-5):
    conv = lax.conv_general_dilated(
        x_nchw, w_oihw, window_strides=(1, 1), padding=((1, 1), (1, 1)),
        dimension_numbers=("NCHW", "OIHW", "NCHW"),
        precision=lax.Precision.HIGHEST)
    conv = conv + b.reshape(1, -1, 1, 1)
    mean = jnp.mean(conv, axis=(0, 2, 3), keepdims=True)
    var = jnp.mean((conv - mean) ** 2, axis=(0, 2, 3), keepdims=True)
    y = (conv - mean) * lax.rsqrt(var + eps)
    y = y * gamma.reshape(1, -1, 1, 1) + beta.reshape(1, -1, 1, 1)
    return jnp.maximum(y, 0.0)


if __name__ == "__main__":
    # Small shapes consistent with the module: N=2, Cin=4, Cout=8, H=W=16, k=3
    N, Cin, Cout, H, W, Kk = 2, 4, 8, 16, 16, 3

    key = jax.random.PRNGKey(0)
    kx, kw, kb = jax.random.split(key, 3)
    x = jax.random.normal(kx, (N, Cin, H, W), dtype=jnp.float32)
    w = jax.random.normal(kw, (Cout, Cin, Kk, Kk), dtype=jnp.float32) * 0.1
    b = jax.random.normal(kb, (Cout,), dtype=jnp.float32) * 0.1
    gamma = jnp.ones((Cout,), dtype=jnp.float32)   # BatchNorm2d affine init
    beta = jnp.zeros((Cout,), dtype=jnp.float32)

    ref = _reference(x, w, b, gamma, beta)

    # Fast bf16 path (default): bf16-level tolerance.
    out = jax.jit(cbr2d_forward)(x, w, b, gamma, beta)
    out = jax.block_until_ready(out)
    assert out.shape == (N, Cout, H, W)
    assert jnp.allclose(out, ref, rtol=5e-2, atol=5e-2)

    # Strict f32 path: tight tolerance.
    out32 = jax.jit(functools.partial(cbr2d_forward, use_bf16=False))(
        x, w, b, gamma, beta)
    out32 = jax.block_until_ready(out32)
    assert jnp.allclose(out32, ref, rtol=1e-3, atol=1e-3)

    print("KERNEL_OK")
</pallas_src>

<mosaic_0001>
module attributes {stable_mosaic.version = 11 : i64} {
  func.func @conv_stats_kernel(%arg0: i32, %arg1: i32, %arg2: memref<8x48xbf16, #tpu.memory_space<vmem>>, %arg3: memref<1x48x128xbf16, #tpu.memory_space<vmem>>, %arg4: memref<1x8x128xbf16, #tpu.memory_space<vmem>>, %arg5: memref<1x1x8x1xf32, #tpu.memory_space<vmem>>, %arg6: memref<1x1x8x1xf32, #tpu.memory_space<vmem>>) attributes {dimension_semantics = [#tpu.dimension_semantics<parallel>, #tpu.dimension_semantics<parallel>], iteration_bounds = array<i64: 2, 2>, scalar_prefetch = 0 : i64, scratch_operands = 0 : i64, tpu.core_type = #tpu.core_type<tc>, window_params = [{pipeline_mode = #tpu.pipeline_mode<synchronous>, transform_indices = @transform_0, window_bounds = array<i64: 8, 48>}, {transform_indices = @transform_1, window_bounds = array<i64: 1, 48, 128>}, {transform_indices = @transform_2, window_bounds = array<i64: 1, 8, 128>}, {transform_indices = @transform_3, window_bounds = array<i64: 1, 1, 8, 1>}, {transform_indices = @transform_4, window_bounds = array<i64: 1, 1, 8, 1>}]} {
    %c0 = arith.constant 0 : index
    %c0_0 = arith.constant 0 : index
    %0 = vector.load %arg2[%c0, %c0_0] : memref<8x48xbf16, #tpu.memory_space<vmem>>, vector<8x48xbf16>
    %c0_1 = arith.constant 0 : index
    %c0_2 = arith.constant 0 : index
    %c0_3 = arith.constant 0 : index
    %1 = vector.load %arg3[%c0_1, %c0_2, %c0_3] : memref<1x48x128xbf16, #tpu.memory_space<vmem>>, vector<1x48x128xbf16>
    %2 = vector.shape_cast %1 : vector<1x48x128xbf16> to vector<48x128xbf16>
    %cst = arith.constant dense<0.000000e+00> : vector<8x128xf32>
    %3 = tpu.matmul %0, %2, %cst {dimension_numbers = #tpu.dot_dimension_numbers<[1], [0], [0], [1], [0, 0, 1, 1], [], []>} : vector<8x48xbf16>, vector<48x128xbf16>, vector<8x128xf32> -> vector<8x128xf32>
    %4 = arith.truncf %3 : vector<8x128xf32> to vector<8x128xbf16>
    %5 = vector.shape_cast %4 : vector<8x128xbf16> to vector<1x8x128xbf16>
    %c0_4 = arith.constant 0 : index
    %c0_5 = arith.constant 0 : index
    %c0_6 = arith.constant 0 : index
    %6 = vector.load %arg4[%c0_4, %c0_5, %c0_6] : memref<1x8x128xbf16, #tpu.memory_space<vmem>>, vector<1x8x128xbf16>
    tpu.vector_store %arg4[%c0_4, %c0_5, %c0_6], %5 {strides = array<i32>} : memref<1x8x128xbf16, #tpu.memory_space<vmem>>, vector<1x8x128xbf16>,
    %cst_7 = arith.constant dense<0.000000e+00> : vector<8xf32>
    %7 = vector.multi_reduction <add>, %3, %cst_7 [1] : vector<8x128xf32> to vector<8xf32>
    %8 = vector.shape_cast %7 : vector<8xf32> to vector<8x1xf32>
    %9 = vector.shape_cast %8 : vector<8x1xf32> to vector<1x1x8x1xf32>
    %c0_8 = arith.constant 0 : index
    %c0_9 = arith.constant 0 : index
    %c0_10 = arith.constant 0 : index
    %c0_11 = arith.constant 0 : index
    %10 = vector.load %arg5[%c0_8, %c0_9, %c0_10, %c0_11] : memref<1x1x8x1xf32, #tpu.memory_space<vmem>>, vector<1x1x8x1xf32>
    tpu.vector_store %arg5[%c0_8, %c0_9, %c0_10, %c0_11], %9 {strides = array<i32>} : memref<1x1x8x1xf32, #tpu.memory_space<vmem>>, vector<1x1x8x1xf32>,
    %11 = arith.mulf %3, %3 : vector<8x128xf32>
    %cst_12 = arith.constant dense<0.000000e+00> : vector<8xf32>
    %12 = vector.multi_reduction <add>, %11, %cst_12 [1] : vector<8x128xf32> to vector<8xf32>
    %13 = vector.shape_cast %12 : vector<8xf32> to vector<8x1xf32>
    %14 = vector.shape_cast %13 : vector<8x1xf32> to vector<1x1x8x1xf32>
    %c0_13 = arith.constant 0 : index
    %c0_14 = arith.constant 0 : index
    %c0_15 = arith.constant 0 : index
    %c0_16 = arith.constant 0 : index
    %15 = vector.load %arg6[%c0_13, %c0_14, %c0_15, %c0_16] : memref<1x1x8x1xf32, #tpu.memory_space<vmem>>, vector<1x1x8x1xf32>
    tpu.vector_store %arg6[%c0_13, %c0_14, %c0_15, %c0_16], %14 {strides = array<i32>} : memref<1x1x8x1xf32, #tpu.memory_space<vmem>>, vector<1x1x8x1xf32>,
    return
  }
  func.func @transform_0(%arg0: i32, %arg1: i32) -> (i32, i32) {
    %c0_i32 = arith.constant 0 : i32
    %c0_i32_0 = arith.constant 0 : i32
    %c0_i32_1 = arith.constant 0 : i32
    return %c0_i32, %c0_i32_0 : i32, i32
  }
  func.func @transform_1(%arg0: i32, %arg1: i32) -> (i32, i32, i32) {
    %c0_i32 = arith.constant 0 : i32
    %c0_i32_0 = arith.constant 0 : i32
    return %arg0, %c0_i32, %arg1 : i32, i32, i32
  }
  func.func @transform_2(%arg0: i32, %arg1: i32) -> (i32, i32, i32) {
    %c0_i32 = arith.constant 0 : i32
    %c0_i32_0 = arith.constant 0 : i32
    return %arg0, %c0_i32, %arg1 : i32, i32, i32
  }
  func.func @transform_3(%arg0: i32, %arg1: i32) -> (i32, i32, i32, i32) {
    %c0_i32 = arith.constant 0 : i32
    %c0_i32_0 = arith.constant 0 : i32
    %c0_i32_1 = arith.constant 0 : i32
    return %arg0, %arg1, %c0_i32, %c0_i32_0 : i32, i32, i32, i32
  }
  func.func @transform_4(%arg0: i32, %arg1: i32) -> (i32, i32, i32, i32) {
    %c0_i32 = arith.constant 0 : i32
    %c0_i32_0 = arith.constant 0 : i32
    %c0_i32_1 = arith.constant 0 : i32
    return %arg0, %arg1, %c0_i32, %c0_i32_0 : i32, i32, i32, i32
  }
}

module attributes {stable_mosaic.version = 11 : i64} {
  func.func @bn_relu_kernel(%arg0: i32, %arg1: i32, %arg2: memref<1x8x1xf32, #tpu.memory_space<vmem>>, %arg3: memref<1x8x1xf32, #tpu.memory_space<vmem>>, %arg4: memref<1x8x128xbf16, #tpu.memory_space<vmem>>, %arg5: memref<1x8x128xf32, #tpu.memory_space<vmem>>) attributes {dimension_semantics = [#tpu.dimension_semantics<parallel>, #tpu.dimension_semantics<parallel>], iteration_bounds = array<i64: 2, 2>, scalar_prefetch = 0 : i64, scratch_operands = 0 : i64, tpu.core_type = #tpu.core_type<tc>, window_params = [{pipeline_mode = #tpu.pipeline_mode<synchronous>, transform_indices = @transform_0, window_bounds = array<i64: 1, 8, 1>}, {pipeline_mode = #tpu.pipeline_mode<synchronous>, transform_indices = @transform_1, window_bounds = array<i64: 1, 8, 1>}, {transform_indices = @transform_2, window_bounds = array<i64: 1, 8, 128>}, {transform_indices = @transform_3, window_bounds = array<i64: 1, 8, 128>}]} {
    %c0 = arith.constant 0 : index
    %c0_0 = arith.constant 0 : index
    %c0_1 = arith.constant 0 : index
    %0 = vector.load %arg4[%c0, %c0_0, %c0_1] : memref<1x8x128xbf16, #tpu.memory_space<vmem>>, vector<1x8x128xbf16>
    %1 = arith.extf %0 : vector<1x8x128xbf16> to vector<1x8x128xf32>
    %c0_2 = arith.constant 0 : index
    %c0_3 = arith.constant 0 : index
    %c0_4 = arith.constant 0 : index
    %2 = vector.load %arg2[%c0_2, %c0_3, %c0_4] : memref<1x8x1xf32, #tpu.memory_space<vmem>>, vector<1x8x1xf32>
    %3 = vector.broadcast %2 : vector<1x8x1xf32> to vector<1x8x128xf32>
    %4 = arith.mulf %1, %3 : vector<1x8x128xf32>
    %c0_5 = arith.constant 0 : index
    %c0_6 = arith.constant 0 : index
    %c0_7 = arith.constant 0 : index
    %5 = vector.load %arg3[%c0_5, %c0_6, %c0_7] : memref<1x8x1xf32, #tpu.memory_space<vmem>>, vector<1x8x1xf32>
    %6 = vector.broadcast %5 : vector<1x8x1xf32> to vector<1x8x128xf32>
    %7 = arith.addf %4, %6 : vector<1x8x128xf32>
    %cst = arith.constant 0.000000e+00 : f32
    %8 = vector.broadcast %cst : f32 to vector<1x8x128xf32>
    %9 = arith.maximumf %7, %8 : vector<1x8x128xf32>
    %c0_8 = arith.constant 0 : index
    %c0_9 = arith.constant 0 : index
    %c0_10 = arith.constant 0 : index
    %10 = vector.load %arg5[%c0_8, %c0_9, %c0_10] : memref<1x8x128xf32, #tpu.memory_space<vmem>>, vector<1x8x128xf32>
    tpu.vector_store %arg5[%c0_8, %c0_9, %c0_10], %9 {strides = array<i32>} : memref<1x8x128xf32, #tpu.memory_space<vmem>>, vector<1x8x128xf32>,
    return
  }
  func.func @transform_0(%arg0: i32, %arg1: i32) -> (i32, i32, i32) {
    %c0_i32 = arith.constant 0 : i32
    %c0_i32_0 = arith.constant 0 : i32
    %c0_i32_1 = arith.constant 0 : i32
    %c0_i32_2 = arith.constant 0 : i32
    return %c0_i32, %c0_i32_0, %c0_i32_1 : i32, i32, i32
  }
  func.func @transform_1(%arg0: i32, %arg1: i32) -> (i32, i32, i32) {
    %c0_i32 = arith.constant 0 : i32
    %c0_i32_0 = arith.constant 0 : i32
    %c0_i32_1 = arith.constant 0 : i32
    %c0_i32_2 = arith.constant 0 : i32
    return %c0_i32, %c0_i32_0, %c0_i32_1 : i32, i32, i32
  }
  func.func @transform_2(%arg0: i32, %arg1: i32) -> (i32, i32, i32) {
    %c0_i32 = arith.constant 0 : i32
    %c0_i32_0 = arith.constant 0 : i32
    return %arg0, %c0_i32, %arg1 : i32, i32, i32
  }
  func.func @transform_3(%arg0: i32, %arg1: i32) -> (i32, i32, i32) {
    %c0_i32 = arith.constant 0 : i32
    %c0_i32_0 = arith.constant 0 : i32
    return %arg0, %c0_i32, %arg1 : i32, i32, i32
  }
}

</mosaic_0001>

<bundles_post_ra>
// kernel: cbr2d_forward.3
= control target key start
LH: loop header
LB: loop body
LE: loop exit
PB: predicated region body
PF: predicated region fallthrough
CT: control target
= control target key end

     0   :  { %s420_s12 = smov 0   ;;  %s422_s13 = smov 0   ;;  %s477_s0 = inlined_call_operand.vmem [shape: f32[1,8,1], index: 0, kind: input, shape index: {}]   ;;  %s478_s1 = inlined_call_operand.vmem [shape: f32[1,8,1], index: 1, kind: input, shape index: {}]   ;;  %s479_s2 = inlined_call_operand.vmem [shape: bf16[2,8,256], index: 2, kind: input, shape index: {}]   ;;  %s480_s3 = inlined_call_operand.vmem [shape: f32[2,8,256], index: 3, kind: output, shape index: {}]  }
   0x1   :  { %s424_s14 = smov 0   ;;  %s426_s15 = smov 0  }
   0x2   :  { %s428_s16 = smov 0  }
   0x3 LB: > { %s22_s17 = sadd.s32 1, %s389_s14  ;;  %s25_s18 = sadd.s32 1, %s393_s15  ;;  %s397_s16 = sphi %s428_s16, %s13_s16   ;;  %s393_s15 = sphi %s426_s15, %s484_s15   ;;  %s389_s14 = sphi %s424_s14, %s483_s14   ;;  %s385_s13 = sphi %s422_s13, %s482_s13   ;;  %s381_s12 = sphi %s420_s12, %s481_s12  }
   0x4   : > { %p23_p0 = scmp.ge.s32.totalorder %s22_s17, 2  ;;  %p310_p1 = scmp.ge.s32.totalorder %s397_s16, 1 }
   0x5   : > { %p156_p2 = scmp.lt.s32.totalorder %s397_s16, 5 }
   0x6   : > { %s486_s17 = smov (%p23_p0, %s22_s17), 0  ;;  %s488_s18 = smov (!%p23_p0, %s25_s18), %s393_s15 }
   0x7   : > { %p157_p3 = pnand %p310_p1, %p156_p2  ;;  %p27_p4 = scmp.ge.s32.totalorder %s488_s18, 2 }
   0x8   : > { %v204_v0 = vld [vmem:[%s477_s0] sm:$0xff] (!%p157_p3)  ;;  %v399_v1 = vmov (!%p157_p3), 0   ;;  %p186_p5 = scmp.lt.s32.totalorder (!%p157_p3), %s385_s13, 1  ;;  %p188_p6 = scmp.lt.s32.totalorder (!%p157_p3), %s381_s12, 1 }
   0x9   : > { %s490_s18 = smov (%p27_p4, %s488_s18), 0  ;;  %160 = sbr.rel (%p157_p3) target bundleno = 148 (0x94), region = 32 }
   0xa   : > { %358 = vset.pattern.permute.xlu0 (!%p157_p3), %v399_v1  ;;  %v211_v2 = vld [vmem:[%s478_s1] sm:$0xff] (!%p157_p3) }
   0xb   : > { %207 = vperm.xlu0 (!%p157_p3), %358, %v204_v0  }
   0xf   : > { %214 = vperm.xlu0 (!%p157_p3), %358, %v211_v2  }
  0x10   : > { %s492_s13 = smov (!%p186_p5, %s385_s13), 1  ;;  %s494_s12 = smov (!%p188_p6, %s381_s12), 1 }
  0x11   : > { %s311_s23 = sshll.u32 %s492_s13, 1 }
  0x12   : > { %s191_s24 = sadd.s32 %s311_s23, %s494_s12 }
  0x13   : > { %s312_s25 = sshll.u32 %s191_s24, 2  ;;  %s314_s29 = sshll.u32 %s191_s24, 3 }
  0x14   : > { %s193_s28 = scalar_lea.vmem %s479_s2, %s312_s25  ;;  %s201_s5 = scalar_lea.vmem %s480_s3, %s314_s29 }
  0x15   : > { %v202_v3 = vld [vmem:[%s193_s28] sm:$0xf] }
  0x16   : > { %v203_v4 = vunpack.c.l.bf16 %v202_v3 }
  0x8a   : > { %v208_v5 = vpop.permute.xlu0 %207 }
  0x8b   : > { %v210_v6 = vmul.f32 %v208_v5, %v203_v4 }
  0x8e   : > { %v215_v7 = vpop.permute.xlu0 %214 }
  0x8f   : > { %v217_v8 = vadd.f32 %v215_v7, %v210_v6 }
  0x91   : > { %v218_v9 = vmax.f32 %v217_v8, 0.0 }
  0x93   : > { %219 = vst [vmem:[%s201_s5] sm:$0xff] %v218_v9 }
  0x94 PF: > { %s13_s16 = sadd.s32 1, %s397_s16   ;;  %s481_s12 = smov %s389_s14 }
  0x95   : > { %p10_p7 = scmp.ge.s32.totalorder %s13_s16, 6   ;;  %s482_s13 = smov %s393_s15 }
  0x96   : > { %s483_s14 = smov %s486_s17  ;;  %s484_s15 = smov %s490_s18 }
  0x97   :  { %12 = sbr.rel (!%p10_p7) target bundleno = 3 (0x3), region = 62 }

// kernel: cbr2d_forward.2
= control target key start
LH: loop header
LB: loop body
LE: loop exit
PB: predicated region body
PF: predicated region fallthrough
CT: control target
= control target key end

     0   :  { %s765_s15 = smov 0   ;;  %s767_s16 = smov 0   ;;  %s865_s0 = inlined_call_operand.vmem [shape: bf16[8,48], index: 0, kind: input, shape index: {}]   ;;  %s866_s1 = inlined_call_operand.vmem [shape: bf16[2,48,256], index: 1, kind: input, shape index: {}]   ;;  %s867_s2 = inlined_call_operand.vmem [shape: bf16[2,8,256], index: 2, kind: output, shape index: {0}]   ;;  %s868_s3 = inlined_call_operand.vmem [shape: f32[2,2,8,1], index: 3, kind: output, shape index: {1}]   ;;  %s869_s4 = inlined_call_operand.vmem [shape: f32[2,2,8,1], index: 4, kind: output, shape index: {2}]  }
   0x1   :  { %s769_s17 = smov 0   ;;  %s771_s18 = smov 0  }
   0x2   :  { %s773_s19 = smov 0   ;;  %s775_s20 = smov 0  }
   0x3   :  { %s777_s21 = smov 0  }
   0x4 LB: > { %s24_s22 = sadd.s32 1, %s728_s19  ;;  %s27_s23 = sadd.s32 1, %s732_s20  ;;  %s736_s21 = sphi %s777_s21, %s15_s21   ;;  %s732_s20 = sphi %s775_s20, %s875_s20   ;;  %s728_s19 = sphi %s773_s19, %s874_s19   ;;  %s724_s18 = sphi %s771_s18, %s873_s18   ;;  %s720_s17 = sphi %s769_s17, %s872_s17   ;;  %s716_s16 = sphi %s767_s16, %s871_s16   ;;  %s712_s15 = sphi %s765_s15, %s870_s15  }
   0x5   : > { %p25_p0 = scmp.ge.s32.totalorder %s24_s22, 2  ;;  %p64_p1 = scmp.ne.s32.totalorder %s716_s16, %s712_s15 }
   0x6   : > { %p65_p2 = scmp.eq.s32.totalorder %s736_s21, 0  ;;  %s57_s27 = sadd.s32 1, %s716_s16 }
   0x7   : > { %s877_s22 = smov (%p25_p0, %s24_s22), 0  ;;  %s879_s23 = smov (!%p25_p0, %s27_s23), %s732_s20 }
   0x8   : > { %p66_p3 = por %p65_p2, %p64_p1  ;;  %p29_p4 = scmp.ge.s32.totalorder %s879_s23, 2 }
   0x9   : > { %s53_s24 = ssub.s32 %s728_s19, %s877_s22  ;;  %p589_p6 = scmp.ge.s32.totalorder %s736_s21, 4 }
   0xa   : > { %s881_s23 = smov (%p29_p4, %s879_s23), 0 }
   0xb   : > { %s52_s25 = ssub.s32 %s732_s20, %s881_s23  ;;  %177 = sbr.rel (%p589_p6) target bundleno = 29 (0x1d), region = 20 }
   0xc   : > { %s54_s26 = sor.u32 %s53_s24, %s52_s25 }
   0xd   : > { %p55_p5 = scmp.eq.s32.totalorder %s54_s26, 0 }
   0xf   : > { %s816_s28 = scalar_select %p55_p5, %s716_s16, %s57_s27  }
  0x12   : > { %180 = sbr.rel (!%p66_p3) target bundleno = 29 (0x1d), region = 24  ;;  %s182_s29 = sand.u32 (%p66_p3), 1, %s716_s16  }
  0x13   : > { %s619_s30 = smul.u32 (%p66_p3), 12, %s732_s20 }
  0x14   : > { %s618_s5 = smul.u32 (%p66_p3), 24, %s182_s29 }
  0x15   : > { %s186_s6 = sadd.s32 (%p66_p3), %s728_s19, %s619_s30 }
  0x16   : > { %s590_s7 = sshll.u32 (%p66_p3), %s186_s6, 2  ;;  %s184_s11 = scalar_lea.vmem (%p66_p3), [#allocation2], %s618_s5 }
  0x17   : > { %s188_s10 = scalar_lea.vmem (%p66_p3), %s866_s1, %s590_s7 }
  0x18   : > { %v204_v0 = vld [vmem:[%s188_s10] sm:$0xf] (%p66_p3)  ;;  %v206_v1 = vld [vmem:[%s188_s10 + $0x8] sm:$0xf] (%p66_p3)  ;;  %v208_v2 = vld [vmem:[%s188_s10 + $0x10] sm:$0xf] (%p66_p3) }
  0x19   : > { %205 = vst [vmem:[%s184_s11] sm:$0xf] %v204_v0  ;;  %207 = vst [vmem:[%s184_s11 + $0x4] sm:$0xf] %v206_v1  ;;  %v210_v3 = vld [vmem:[%s188_s10 + $0x18] sm:$0xf] }
  0x1a   : > { %209 = vst [vmem:[%s184_s11 + $0x8] sm:$0xf] %v208_v2  ;;  %v212_v4 = vld [vmem:[%s188_s10 + $0x20] sm:$0xf]  ;;  %v214_v5 = vld [vmem:[%s188_s10 + $0x28] sm:$0xf] }
  0x1b   : > { %211 = vst [vmem:[%s184_s11 + $0xc] sm:$0xf] %v210_v3  ;;  %213 = vst [vmem:[%s184_s11 + $0x10] sm:$0xf] %v212_v4 }
  0x1c   : > { %215 = vst [vmem:[%s184_s11 + $0x14] sm:$0xf] %v214_v5 }
  0x1d PF: > { %p591_p7 = scmp.ge.s32.totalorder %s736_s21, 1  ;;  %p249_p8 = scmp.lt.s32.totalorder %s736_s21, 5 }
  0x1f   : > { %p250_p9 = pnand %p591_p7, %p249_p8 }
  0x20   : > { %s256_s12 = sand.u32 (!%p250_p9), 1, %s712_s15   ;;  %v738_v6 = vmov (!%p250_p9), 0.0   ;;  %vm739_vm0 = vmmov (!%p250_p9), 0   ;;  %v325_v10 = vld [vmem:[%s865_s0] sm:$0xf] (!%p250_p9)  ;;  %vm350_vm1 = vcmask (!%p250_p9), 392192  }
  0x21   : > { %253 = sbr.rel (%p250_p9) target bundleno = 408 (0x198), region = 65  ;;  %608 = vmatprep.subr.bf16.mxu0 (!%p250_p9), %v738_v6  ;;  %614 = vmatprep.mubr.msk.bf16.mxu0 (!%p250_p9), %vm739_vm0, %v738_v6  ;;  %p300_p10 = scmp.lt.s32.totalorder (!%p250_p9), %s724_s18, 1  ;;  %vm398_vm2 = vcmask (!%p250_p9), 7168  }
  0x22   : > { %s620_s13 = smul.u32 (!%p250_p9), 24, %s256_s12  ;;  %p302_p11 = scmp.lt.s32.totalorder (!%p250_p9), %s720_s17, 1 }
  0x24   : > { %s258_s14 = scalar_lea.vmem (!%p250_p9), [#allocation2], %s620_s13 }
  0x25   : > { %v679_v7 = vld [vmem:[%s258_s14] sm:$0xff] (!%p250_p9)   ;;  %v680_v8 = vld [vmem:[%s258_s14 + $0x8] sm:$0xff] (!%p250_p9)   ;;  %v681_v9 = vld [vmem:[%s258_s14 + $0x10] sm:$0xff] (!%p250_p9)  }
  0x26   : > { %609 = vmatpush3.bf16.msra.mxu0 (!%p250_p9), %v679_v7 }
  0x27   : > { %610 = vmatprep.subr.bf16.mxu0 (!%p250_p9), %v738_v6 }
  0x28   : > { %s883_s18 = smov (!%p300_p10, %s724_s18), 1  ;;  %s885_s17 = smov (!%p302_p11, %s720_s17), 1 }
  0x29   : > { %s592_s25 = sshll.u32 %s883_s18, 1 }
  0x2a   : > { %611 = vmatpush3.bf16.msra.mxu0 %v680_v8  ;;  %s305_s26 = sadd.s32 %s592_s25, %s885_s17 }
  0x2b   : > { %612 = vmatprep.subr.bf16.mxu0 %v738_v6  ;;  %s593_s27 = sshll.u32 %s305_s26, 2  ;;  %s595_s6 = sshll.u32 %s305_s26, 3 }
  0x2c   : > { %s307_s5 = scalar_lea.vmem %s867_s2, %s593_s27  ;;  %s315_s18 = scalar_lea.vmem %s868_s3, %s595_s6 }
  0x2d   : > { %s323_s10 = scalar_lea.vmem %s869_s4, %s595_s6 }
  0x2e   : > { %613 = vmatpush3.bf16.msra.mxu0 %v681_v9 }
  0x31   : > { %615 = vmatmul.mubr.msk.bf16.vlgmr.msra.gmra.mrb[0].mxu0 %vm350_vm1, %v325_v10 }
 0x104   : > { %v388_v11 = vpop.f32.mrb[0].mxu0 }
 0x105   : > { %v394_v12 = vpack.c.bf16 %v388_v11, %v388_v11  ;;  %396 = vadd.xlane.f32.xlu0 %v388_v11  ;;  %v616_v13 = vpop.f32.mrb[1].mxu0  ;;  %v400_v16 = vmul.f32 %v388_v11, %v388_v11 }
 0x106   : > { %v391_v14 = vpop.f32.mrb[2].mxu0 }
 0x107   : > { %395 = vst [vmem:[%s307_s5] sm:$0xf] %v394_v12  ;;  %v617_v15 = vpop.f32.mrb[3].mxu0 }
 0x109   : > { %401 = vadd.xlane.f32.xlu0 %v400_v16 }
 0x192   : > { %v397_v17 = vpop.xlane.xlu0 %396 }
 0x193   : > { %399 = vst.msk [vmem:[%s315_s18] sm:$0xff] %vm398_vm2, %v397_v17 }
 0x196   : > { %v402_v18 = vpop.xlane.xlu0 %401 }
 0x197   : > { %403 = vst.msk [vmem:[%s323_s10] sm:$0xff] %vm398_vm2, %v402_v18 }
 0x198 PF: > { %s15_s21 = sadd.s32 1, %s736_s21   ;;  %s870_s15 = smov %s716_s16 }
 0x199   : > { %p12_p12 = scmp.ge.s32.totalorder %s15_s21, 6   ;;  %s871_s16 = smov %s816_s28 }
 0x19a   : > { %s872_s17 = smov %s728_s19  ;;  %s873_s18 = smov %s732_s20 }
 0x19b   : > { %s874_s19 = smov %s877_s22  ;;  %s875_s20 = smov %s881_s23 }
 0x19c   :  { %14 = sbr.rel (!%p12_p12) target bundleno = 4 (0x4), region = 128 }

</bundles_post_ra>
